<compile_context>
chip_gen: v5e
topology: v5e:2x2
jax: 0.10.0
libtpu: 0.0.40
codegen_flags: <defaults>
</compile_context>

<pallas_src>
import jax
import jax.numpy as jnp
from jax.experimental import pallas as pl
from jax.experimental.pallas import tpu as pltpu


def _round_up(x, m):
    return ((x + m - 1) // m) * m


# ----------------------------- kernels --------------------------------------

def _make_fused_kernel(num_res):
    """fc1 (Linear+bias+ReLU) + `num_res` residual blocks, fused per batch tile.

    Residual weights arrive as VMEM-resident (L, D, D) stacks; the layer loop
    is unrolled statically (L is a compile-time constant, small).
    """
    if num_res == 0:
        def kernel(x_ref, w_ref, b_ref, o_ref):
            # x_ref: (tm, K) bf16   w_ref: (K, D) bf16   b_ref: (1, D) f32
            h = jnp.dot(x_ref[...], w_ref[...],
                        preferred_element_type=jnp.float32)
            o_ref[...] = jnp.maximum(h + b_ref[...], 0.0).astype(o_ref.dtype)
        return kernel

    def kernel(x_ref, w_ref, b_ref, w1_ref, w2_ref, o_ref):
        # x_ref: (tm, K) bf16      w_ref: (K, D) bf16     b_ref: (1, D) f32
        # w1_ref / w2_ref: (L, D, D) bf16 (resident)      o_ref: (tm, D)
        h = jnp.dot(x_ref[...], w_ref[...], preferred_element_type=jnp.float32)
        act = jnp.maximum(h + b_ref[...], 0.0)           # f32 activation
        act_bf = act.astype(jnp.bfloat16)                # bf16 shadow for MXU
        for l in range(num_res):                         # static unroll
            t = jnp.dot(act_bf, w1_ref[l], preferred_element_type=jnp.float32)
            t = jnp.maximum(t, 0.0).astype(jnp.bfloat16)
            t = jnp.dot(t, w2_ref[l], preferred_element_type=jnp.float32)
            act = act + jnp.maximum(t, 0.0)              # f32 residual add
            act_bf = act.astype(jnp.bfloat16)
        o_ref[...] = act.astype(o_ref.dtype)

    return kernel


# ----------------------------- wrapper ---------------------------------------

def dim_reduction_forward(x, params, *, max_tm=512):
    """Forward pass of DimReduction (inference; dropout == 0).

    params: dict with
      'fc1_w' : (n_channels, m_dim), 'fc1_b' : (m_dim,)
      'res'   : list of (w1, w2), each (m_dim, m_dim)
    """
    fc1_w = params["fc1_w"]
    fc1_b = params["fc1_b"]
    res = params["res"]

    M, K = x.shape
    K2, D = fc1_w.shape
    assert K == K2
    out_dtype = x.dtype
    L = len(res)

    # Batch tile: biggest (8-aligned) tile that fits max_tm.  For larger
    # batches make sure the 'parallel' axis has >= 2 blocks so v7x's two
    # TensorCores both get work, keeping each tile MXU-sized (>=128 rows).
    tm = min(max_tm, _round_up(M, 8))
    if M >= 256:
        tm = min(tm, max(128, _round_up(-(-M // 2), 8)))
    m_pad = _round_up(M, tm)
    if m_pad != M:
        x = jnp.pad(x, ((0, m_pad - M), (0, 0)))
    nb = m_pad // tm

    # bf16 MXU operands (f32 accumulation in-kernel); bias stays f32.
    x_bf = x.astype(jnp.bfloat16)
    w_bf = fc1_w.astype(jnp.bfloat16)
    b2 = fc1_b.reshape(1, D).astype(jnp.float32)

    # Explicit VMEM budget (portable down to v7x's 64 MiB physical VMEM).
    vmem_bytes = (2 * tm * K * 2              # double-buffered x tile (bf16)
                  + K * D * 2                 # fc1 weights (bf16)
                  + D * 4                     # bias
                  + 2 * 2 * L * D * D * 2     # residual weight stacks (bf16)
                  + 2 * tm * D * 4            # double-buffered output
                  + 6 * tm * D * 4)           # in-kernel f32/bf16 temporaries
    vmem_limit = int(min(max(2 * vmem_bytes, 8 << 20), 48 << 20))

    in_specs = [
        pl.BlockSpec((tm, K), lambda i: (i, 0)),
        pl.BlockSpec((K, D), lambda i: (0, 0)),
        pl.BlockSpec((1, D), lambda i: (0, 0)),
    ]
    operands = [x_bf, w_bf, b2]

    if L > 0:
        res_w1 = jnp.stack([w1 for (w1, _) in res]).astype(jnp.bfloat16)
        res_w2 = jnp.stack([w2 for (_, w2) in res]).astype(jnp.bfloat16)
        # Constant-index (L, D, D) blocks: DMA'd once, VMEM-resident.
        in_specs += [
            pl.BlockSpec((L, D, D), lambda i: (0, 0, 0)),
            pl.BlockSpec((L, D, D), lambda i: (0, 0, 0)),
        ]
        operands += [res_w1, res_w2]

    out = pl.pallas_call(
        _make_fused_kernel(L),
        out_shape=jax.ShapeDtypeStruct((m_pad, D), out_dtype),
        grid=(nb,),
        in_specs=in_specs,
        out_specs=pl.BlockSpec((tm, D), lambda i: (i, 0)),
        compiler_params=pltpu.CompilerParams(
            dimension_semantics=("parallel",),
            vmem_limit_bytes=vmem_limit),
    )(*operands)
    return out[:M]


# ----------------------------- references (plain JAX) ------------------------

def _reference_bf16(x, params):
    # Mirrors the kernel math: bf16 MXU operands, f32 accumulation/epilogue.
    def mm(a, b):
        return jax.lax.dot(a.astype(jnp.bfloat16), b.astype(jnp.bfloat16),
                           preferred_element_type=jnp.float32)
    y = jnp.maximum(mm(x, params["fc1_w"]) + params["fc1_b"], 0.0)
    for (w1, w2) in params["res"]:
        t = jnp.maximum(mm(jnp.maximum(mm(y, w1), 0.0), w2), 0.0)
        y = y + t
    return y


def _reference_f32(x, params):
    y = jnp.maximum(x @ params["fc1_w"] + params["fc1_b"], 0.0)
    for (w1, w2) in params["res"]:
        t = jnp.maximum(jnp.maximum(y @ w1, 0.0) @ w2, 0.0)
        y = y + t
    return y


# ----------------------------- main ------------------------------------------

if __name__ == "__main__":
    batch = 8
    n_channels = 256
    m_dim = 128
    num_layer_res = 2

    key = jax.random.PRNGKey(0)
    k_x, k_w, k_b, *k_res = jax.random.split(key, 3 + 2 * num_layer_res)

    x = jax.random.normal(k_x, (batch, n_channels), dtype=jnp.float32)

    # Deterministic synthetic parameters (not a checkpoint load).
    scale1 = 1.0 / jnp.sqrt(jnp.float32(n_channels))
    scale2 = 1.0 / jnp.sqrt(jnp.float32(m_dim))
    params = {
        "fc1_w": jax.random.normal(k_w, (n_channels, m_dim), jnp.float32) * scale1,
        "fc1_b": jax.random.normal(k_b, (m_dim,), jnp.float32) * scale1,
        "res": [
            (
                jax.random.normal(k_res[2 * i], (m_dim, m_dim), jnp.float32) * scale2,
                jax.random.normal(k_res[2 * i + 1], (m_dim, m_dim), jnp.float32) * scale2,
            )
            for i in range(num_layer_res)
        ],
    }

    # Main fused path (fc1 + 2 residual blocks), batch multiple of 8.
    out = jax.block_until_ready(dim_reduction_forward(x, params))
    assert out.shape == (batch, m_dim)
    assert jnp.allclose(out, _reference_bf16(x, params), atol=1e-3, rtol=1e-3)
    assert jnp.allclose(out, _reference_f32(x, params), atol=5e-2, rtol=5e-2)

    # Tail handling: batch not a multiple of the 8-row sublane tile.
    x5 = x[:5]
    out5 = jax.block_until_ready(dim_reduction_forward(x5, params))
    assert out5.shape == (5, m_dim)
    assert jnp.allclose(out5, _reference_bf16(x5, params), atol=1e-3, rtol=1e-3)

    # numLayer_Res == 0 path (PyTorch default): fc1 only.
    params0 = {"fc1_w": params["fc1_w"], "fc1_b": params["fc1_b"], "res": []}
    x3 = x[:3]
    out3 = jax.block_until_ready(dim_reduction_forward(x3, params0))
    assert out3.shape == (3, m_dim)
    assert jnp.allclose(out3, _reference_bf16(x3, params0), atol=1e-3, rtol=1e-3)

    # Multi-tile batch (exercises nb >= 2 / the split-for-two-cores path).
    x_big = jnp.tile(x, (40, 1))          # (320, 256) -> 2 batch tiles of 160
    out_big = jax.block_until_ready(dim_reduction_forward(x_big, params))
    assert out_big.shape == (320, m_dim)
    assert jnp.allclose(out_big, _reference_bf16(x_big, params),
                        atol=1e-3, rtol=1e-3)

    print("KERNEL_OK")
</pallas_src>

<mosaic_0001>
module attributes {stable_mosaic.version = 11 : i64} {
  func.func @kernel(%arg0: i32, %arg1: memref<8x256xbf16, #tpu.memory_space<vmem>>, %arg2: memref<256x128xbf16, #tpu.memory_space<vmem>>, %arg3: memref<1x128xf32, #tpu.memory_space<vmem>>, %arg4: memref<2x128x128xbf16, #tpu.memory_space<vmem>>, %arg5: memref<2x128x128xbf16, #tpu.memory_space<vmem>>, %arg6: memref<8x128xf32, #tpu.memory_space<vmem>>) attributes {dimension_semantics = [#tpu.dimension_semantics<parallel>], iteration_bounds = array<i64: 1>, scalar_prefetch = 0 : i64, scratch_operands = 0 : i64, tpu.core_type = #tpu.core_type<tc>, window_params = [{transform_indices = @transform_0, window_bounds = array<i64: 8, 256>}, {pipeline_mode = #tpu.pipeline_mode<synchronous>, transform_indices = @transform_1, window_bounds = array<i64: 256, 128>}, {pipeline_mode = #tpu.pipeline_mode<synchronous>, transform_indices = @transform_2, window_bounds = array<i64: 1, 128>}, {pipeline_mode = #tpu.pipeline_mode<synchronous>, transform_indices = @transform_3, window_bounds = array<i64: 2, 128, 128>}, {pipeline_mode = #tpu.pipeline_mode<synchronous>, transform_indices = @transform_4, window_bounds = array<i64: 2, 128, 128>}, {transform_indices = @transform_5, window_bounds = array<i64: 8, 128>}]} {
    %c0 = arith.constant 0 : index
    %c0_0 = arith.constant 0 : index
    %0 = vector.load %arg1[%c0, %c0_0] : memref<8x256xbf16, #tpu.memory_space<vmem>>, vector<8x256xbf16>
    %c0_1 = arith.constant 0 : index
    %c0_2 = arith.constant 0 : index
    %1 = vector.load %arg2[%c0_1, %c0_2] : memref<256x128xbf16, #tpu.memory_space<vmem>>, vector<256x128xbf16>
    %cst = arith.constant dense<0.000000e+00> : vector<8x128xf32>
    %2 = tpu.matmul %0, %1, %cst {dimension_numbers = #tpu.dot_dimension_numbers<[1], [0], [0], [1], [0, 0, 1, 1], [], []>} : vector<8x256xbf16>, vector<256x128xbf16>, vector<8x128xf32> -> vector<8x128xf32>
    %c0_3 = arith.constant 0 : index
    %c0_4 = arith.constant 0 : index
    %3 = vector.load %arg3[%c0_3, %c0_4] : memref<1x128xf32, #tpu.memory_space<vmem>>, vector<1x128xf32>
    %4 = vector.broadcast %3 : vector<1x128xf32> to vector<8x128xf32>
    %5 = arith.addf %2, %4 : vector<8x128xf32>
    %cst_5 = arith.constant 0.000000e+00 : f32
    %6 = vector.broadcast %cst_5 : f32 to vector<8x128xf32>
    %7 = arith.maximumf %5, %6 : vector<8x128xf32>
    %8 = arith.truncf %7 : vector<8x128xf32> to vector<8x128xbf16>
    %c0_6 = arith.constant 0 : index
    %c0_7 = arith.constant 0 : index
    %c0_8 = arith.constant 0 : index
    %9 = vector.load %arg4[%c0_6, %c0_7, %c0_8] : memref<2x128x128xbf16, #tpu.memory_space<vmem>>, vector<1x128x128xbf16>
    %10 = vector.shape_cast %9 : vector<1x128x128xbf16> to vector<128x128xbf16>
    %cst_9 = arith.constant dense<0.000000e+00> : vector<8x128xf32>
    %11 = tpu.matmul %8, %10, %cst_9 {dimension_numbers = #tpu.dot_dimension_numbers<[1], [0], [0], [1], [0, 0, 1, 1], [], []>} : vector<8x128xbf16>, vector<128x128xbf16>, vector<8x128xf32> -> vector<8x128xf32>
    %cst_10 = arith.constant 0.000000e+00 : f32
    %12 = vector.broadcast %cst_10 : f32 to vector<8x128xf32>
    %13 = arith.maximumf %11, %12 : vector<8x128xf32>
    %14 = arith.truncf %13 : vector<8x128xf32> to vector<8x128xbf16>
    %c0_11 = arith.constant 0 : index
    %c0_12 = arith.constant 0 : index
    %c0_13 = arith.constant 0 : index
    %15 = vector.load %arg5[%c0_11, %c0_12, %c0_13] : memref<2x128x128xbf16, #tpu.memory_space<vmem>>, vector<1x128x128xbf16>
    %16 = vector.shape_cast %15 : vector<1x128x128xbf16> to vector<128x128xbf16>
    %cst_14 = arith.constant dense<0.000000e+00> : vector<8x128xf32>
    %17 = tpu.matmul %14, %16, %cst_14 {dimension_numbers = #tpu.dot_dimension_numbers<[1], [0], [0], [1], [0, 0, 1, 1], [], []>} : vector<8x128xbf16>, vector<128x128xbf16>, vector<8x128xf32> -> vector<8x128xf32>
    %cst_15 = arith.constant 0.000000e+00 : f32
    %18 = vector.broadcast %cst_15 : f32 to vector<8x128xf32>
    %19 = arith.maximumf %17, %18 : vector<8x128xf32>
    %20 = arith.addf %7, %19 : vector<8x128xf32>
    %21 = arith.truncf %20 : vector<8x128xf32> to vector<8x128xbf16>
    %c1 = arith.constant 1 : index
    %c0_16 = arith.constant 0 : index
    %c0_17 = arith.constant 0 : index
    %22 = vector.load %arg4[%c1, %c0_16, %c0_17] : memref<2x128x128xbf16, #tpu.memory_space<vmem>>, vector<1x128x128xbf16>
    %23 = vector.shape_cast %22 : vector<1x128x128xbf16> to vector<128x128xbf16>
    %cst_18 = arith.constant dense<0.000000e+00> : vector<8x128xf32>
    %24 = tpu.matmul %21, %23, %cst_18 {dimension_numbers = #tpu.dot_dimension_numbers<[1], [0], [0], [1], [0, 0, 1, 1], [], []>} : vector<8x128xbf16>, vector<128x128xbf16>, vector<8x128xf32> -> vector<8x128xf32>
    %cst_19 = arith.constant 0.000000e+00 : f32
    %25 = vector.broadcast %cst_19 : f32 to vector<8x128xf32>
    %26 = arith.maximumf %24, %25 : vector<8x128xf32>
    %27 = arith.truncf %26 : vector<8x128xf32> to vector<8x128xbf16>
    %c1_20 = arith.constant 1 : index
    %c0_21 = arith.constant 0 : index
    %c0_22 = arith.constant 0 : index
    %28 = vector.load %arg5[%c1_20, %c0_21, %c0_22] : memref<2x128x128xbf16, #tpu.memory_space<vmem>>, vector<1x128x128xbf16>
    %29 = vector.shape_cast %28 : vector<1x128x128xbf16> to vector<128x128xbf16>
    %cst_23 = arith.constant dense<0.000000e+00> : vector<8x128xf32>
    %30 = tpu.matmul %27, %29, %cst_23 {dimension_numbers = #tpu.dot_dimension_numbers<[1], [0], [0], [1], [0, 0, 1, 1], [], []>} : vector<8x128xbf16>, vector<128x128xbf16>, vector<8x128xf32> -> vector<8x128xf32>
    %cst_24 = arith.constant 0.000000e+00 : f32
    %31 = vector.broadcast %cst_24 : f32 to vector<8x128xf32>
    %32 = arith.maximumf %30, %31 : vector<8x128xf32>
    %33 = arith.addf %20, %32 : vector<8x128xf32>
    %c0_25 = arith.constant 0 : index
    %c0_26 = arith.constant 0 : index
    %34 = vector.load %arg6[%c0_25, %c0_26] : memref<8x128xf32, #tpu.memory_space<vmem>>, vector<8x128xf32>
    tpu.vector_store %arg6[%c0_25, %c0_26], %33 {strides = array<i32>} : memref<8x128xf32, #tpu.memory_space<vmem>>, vector<8x128xf32>,
    return
  }
  func.func @transform_0(%arg0: i32) -> (i32, i32) {
    %c0_i32 = arith.constant 0 : i32
    %c0_i32_0 = arith.constant 0 : i32
    return %arg0, %c0_i32 : i32, i32
  }
  func.func @transform_1(%arg0: i32) -> (i32, i32) {
    %c0_i32 = arith.constant 0 : i32
    %c0_i32_0 = arith.constant 0 : i32
    %c0_i32_1 = arith.constant 0 : i32
    return %c0_i32, %c0_i32_0 : i32, i32
  }
  func.func @transform_2(%arg0: i32) -> (i32, i32) {
    %c0_i32 = arith.constant 0 : i32
    %c0_i32_0 = arith.constant 0 : i32
    %c0_i32_1 = arith.constant 0 : i32
    return %c0_i32, %c0_i32_0 : i32, i32
  }
  func.func @transform_3(%arg0: i32) -> (i32, i32, i32) {
    %c0_i32 = arith.constant 0 : i32
    %c0_i32_0 = arith.constant 0 : i32
    %c0_i32_1 = arith.constant 0 : i32
    %c0_i32_2 = arith.constant 0 : i32
    return %c0_i32, %c0_i32_0, %c0_i32_1 : i32, i32, i32
  }
  func.func @transform_4(%arg0: i32) -> (i32, i32, i32) {
    %c0_i32 = arith.constant 0 : i32
    %c0_i32_0 = arith.constant 0 : i32
    %c0_i32_1 = arith.constant 0 : i32
    %c0_i32_2 = arith.constant 0 : i32
    return %c0_i32, %c0_i32_0, %c0_i32_1 : i32, i32, i32
  }
  func.func @transform_5(%arg0: i32) -> (i32, i32) {
    %c0_i32 = arith.constant 0 : i32
    %c0_i32_0 = arith.constant 0 : i32
    return %arg0, %c0_i32 : i32, i32
  }
}

</mosaic_0001>

<bundles_post_ra>
// kernel: tpu_custom_call.1
= control target key start
LH: loop header
LB: loop body
LE: loop exit
PB: predicated region body
PF: predicated region fallthrough
CT: control target
= control target key end

     0   :  { %10 = vsyncpa [#allocation3], 0  ;;  %s1020_s0 = inlined_call_operand.hbm [shape: bf16[8,256], index: 0, kind: input, shape index: {}]   ;;  %s1021_s1 = inlined_call_operand.hbm [shape: bf16[256,128], index: 1, kind: input, shape index: {}]   ;;  %s1022_s2 = inlined_call_operand.vmem [shape: f32[1,128], index: 2, kind: input, shape index: {}]   ;;  %s1023_s3 = inlined_call_operand.hbm [shape: bf16[2,128,128], index: 3, kind: input, shape index: {}]   ;;  %s1024_s4 = inlined_call_operand.hbm [shape: bf16[2,128,128], index: 4, kind: input, shape index: {}]   ;;  %s1025_s5 = inlined_call_operand.hbm [shape: f32[8,128], index: 5, kind: output, shape index: {}]  }
   0x1   :  { %11 = vsyncpa [#allocation6], 0 }
   0x2   :  { %12 = vsyncpa [#allocation9], 0  ;;  %s29_s20 = sshll.u32 %s1021_s1, 4  ;;  %s30_s20 = int_to_ptr.hbm [resolvable:$true] %s29_s20 }
   0x3   :  { %13 = vsyncpa [#allocation4], 0  ;;  %s965_s21 = smov [#allocation5]   ;;  %s19_s25 = sshll.u32 %s1020_s0, 4  ;;  %s20_s25 = int_to_ptr.hbm [resolvable:$true] %s19_s25 }
   0x4   :  { %s31_s22 = sshll.u32 %s965_s21, 4  ;;  %s966_s26 = smov 64   ;;  %s32_s22 = int_to_ptr.vmem [resolvable:$true] %s31_s22 }
   0x5   :  { %s967_s27 = smov 4   ;;  %s968_s28 = smov [#allocation2]  }
   0x6   :  { %37 = dma.hbm_to_vmem [thread:$0]  %s30_s20, 2048, %s32_s22, [#allocation6], %s966_s26, %s966_s26, %s967_s27  }
   0x7   :  { %s21_s29 = sshll.u32 %s968_s28, 4  ;;  %s44_s7 = sshll.u32 %s1023_s3, 4  ;;  %s22_s29 = int_to_ptr.vmem [resolvable:$true] %s21_s29  ;;  %s45_s7 = int_to_ptr.hbm [resolvable:$true] %s44_s7 }
   0x8   :  { %24 = dma.hbm_to_vmem [thread:$0]  %s20_s25, 128, %s22_s29, [#allocation3]  }
   0x9   :  { %s57_s9 = sshll.u32 %s1024_s4, 4  ;;  %s969_s10 = smov [#allocation7]   ;;  %s58_s9 = int_to_ptr.hbm [resolvable:$true] %s57_s9 }
   0xa   :  { %s46_s11 = sshll.u32 %s969_s10, 4  ;;  %s970_s0 = smov [#allocation8]   ;;  %s47_s11 = int_to_ptr.vmem [resolvable:$true] %s46_s11 }
   0xb   :  { %52 = dma.hbm_to_vmem [thread:$0]  %s45_s7, 2048, %s47_s11, [#allocation6], %s966_s26, %s966_s26, %s967_s27  }
   0xc   :  { %s59_s12 = sshll.u32 %s970_s0, 4  ;;  %s60_s12 = int_to_ptr.vmem [resolvable:$true] %s59_s12 }
   0xd   :  { %65 = dma.hbm_to_vmem [thread:$0]  %s58_s9, 2048, %s60_s12, [#allocation9], %s966_s26, %s966_s26, %s967_s27  }
   0xe   :  { %957 = dma.done.wait [#allocation3], 128  }
   0xf   :  { %958 = vsyncadd [#allocation3], 4294967168 }
  0x10   :  { %959 = dma.done.wait [#allocation6], 4096  }
  0x11   :  { %960 = vsyncadd [#allocation6], 4294963200 }
  0x12   :  { %961 = dma.done.wait [#allocation9], 2048  }
  0x13   :  { %962 = vsyncadd [#allocation9], 4294965248  ;;  %v788_v0 = vld [vmem:[#allocation5 + $0x38] sm:$0xff]  ;;  %v787_v2 = vld [vmem:[#allocation5 + $0x30] sm:$0xff]  ;;  %s577_s16 = sshll.u32 %s1025_s5, 4  ;;  %s578_s16 = int_to_ptr.hbm [resolvable:$true] %s577_s16 }
  0x14   :  { %v796_v1 = vld [vmem:[#allocation5 + $0x78] sm:$0xff]  ;;  %222 = vmatpush.bf16.msra.mxu0 %v788_v0  ;;  %v795_v3 = vld [vmem:[#allocation5 + $0x70] sm:$0xff]  ;;  %v786_v5 = vld [vmem:[#allocation5 + $0x28] sm:$0xff] }
  0x15   :  { %235 = vmatpush.bf16.msra.mxu1 %v796_v1  ;;  %v804_v4 = vld [vmem:[#allocation7 + $0x38] sm:$0xff]  ;;  %v794_v6 = vld [vmem:[#allocation5 + $0x68] sm:$0xff]  ;;  %v803_v7 = vld [vmem:[#allocation7 + $0x30] sm:$0xff] }
  0x16   :  { %314 = vmatpush.bf16.msra.mxu2 %v804_v4  ;;  %v785_v8 = vld [vmem:[#allocation5 + $0x20] sm:$0xff]  ;;  %v802_v10 = vld [vmem:[#allocation7 + $0x28] sm:$0xff]  ;;  %v784_v11 = vld [vmem:[#allocation5 + $0x18] sm:$0xff] }
  0x17   :  { %v793_v9 = vld [vmem:[#allocation5 + $0x60] sm:$0xff]  ;;  %v792_v12 = vld [vmem:[#allocation5 + $0x58] sm:$0xff]  ;;  %v783_v14 = vld [vmem:[#allocation5 + $0x10] sm:$0xff] }
  0x18   :  { %223 = vmatpush.bf16.msra.mxu0 %v787_v2  ;;  %v801_v13 = vld [vmem:[#allocation7 + $0x20] sm:$0xff]  ;;  %v791_v15 = vld [vmem:[#allocation5 + $0x50] sm:$0xff]  ;;  %v800_v16 = vld [vmem:[#allocation7 + $0x18] sm:$0xff] }
  0x19   :  { %236 = vmatpush.bf16.msra.mxu1 %v795_v3  ;;  %v782_v17 = vld [vmem:[#allocation5 + $0x8] sm:$0xff]  ;;  %v82_v19 = vld [vmem:[#allocation2] sm:$0xff]  ;;  %v799_v20 = vld [vmem:[#allocation7 + $0x10] sm:$0xff] }
  0x1a   :  { %315 = vmatpush.bf16.msra.mxu2 %v803_v7  ;;  %v790_v18 = vld [vmem:[#allocation5 + $0x48] sm:$0xff]  ;;  %v120_v21 = vunpack.c.l.b16 %v82_v19  ;;  %v121_v22 = vunpack.c.h.b16 %v82_v19  ;;  %v781_v23 = vld [vmem:[#allocation5] sm:$0xff]  ;;  %v812_v29 = vld [vmem:[#allocation8 + $0x38] sm:$0xff] }
  0x1b   :  { %v789_v24 = vld [vmem:[#allocation5 + $0x40] sm:$0xff]  ;;  %v798_v27 = vld [vmem:[#allocation7 + $0x8] sm:$0xff]  ;;  %393 = vmatpush.bf16.msra.mxu3 %v812_v29  ;;  %v811_v30 = vld [vmem:[#allocation8 + $0x30] sm:$0xff] }
  0x1c   :  { %224 = vmatpush.bf16.msra.mxu0 %v786_v5  ;;  %v122_v25 = vpack.c.b16 %v120_v21, %v120_v21  ;;  %v123_v26 = vpack.c.b16 %v121_v22, %v121_v22  ;;  %v797_v28 = vld [vmem:[#allocation7] sm:$0xff]  ;;  %v810_v31 = vld [vmem:[#allocation8 + $0x28] sm:$0xff]  ;;  %v808_v33 = vld [vmem:[#allocation8 + $0x18] sm:$0xff] }
  0x1d   :  { %237 = vmatpush.bf16.msra.mxu1 %v794_v6  ;;  %v809_v32 = vld [vmem:[#allocation8 + $0x20] sm:$0xff]  ;;  %v807_v34 = vld [vmem:[#allocation8 + $0x10] sm:$0xff]  ;;  %v836_v35 = vld [vmem:[%s1022_s2] ss:$0 sm:$0xff]  ;;  %s971_s2 = smov [#allocation10]  }
  0x1e   :  { %316 = vmatpush.bf16.msra.mxu2 %v802_v10  ;;  %v806_v36 = vld [vmem:[#allocation8 + $0x8] sm:$0xff]  ;;  %v805_v45 = vld [vmem:[#allocation8] sm:$0xff]  ;;  %v820_v46 = vld [vmem:[#allocation7 + $0x78] sm:$0xff]  ;;  %s575_s13 = sshll.u32 %s971_s2, 4  ;;  %s576_s13 = int_to_ptr.vmem [resolvable:$true] %s575_s13 }
  0x1f   :  { %394 = vmatpush.bf16.msra.mxu3 %v811_v30  ;;  %v819_v47 = vld [vmem:[#allocation7 + $0x70] sm:$0xff]  ;;  %v818_v48 = vld [vmem:[#allocation7 + $0x68] sm:$0xff]  ;;  %v817_v49 = vld [vmem:[#allocation7 + $0x60] sm:$0xff] }
  0x20   :  { %225 = vmatpush.bf16.msra.mxu0 %v785_v8  ;;  %v816_v50 = vld [vmem:[#allocation7 + $0x58] sm:$0xff]  ;;  %v815_v51 = vld [vmem:[#allocation7 + $0x50] sm:$0xff]  ;;  %v814_v56 = vld [vmem:[#allocation7 + $0x48] sm:$0xff] }
  0x21   :  { %238 = vmatpush.bf16.msra.mxu1 %v793_v9  ;;  %v813_v57 = vld [vmem:[#allocation7 + $0x40] sm:$0xff]  ;;  %v828_v58 = vld [vmem:[#allocation8 + $0x78] sm:$0xff]  ;;  %v827_v59 = vld [vmem:[#allocation8 + $0x70] sm:$0xff] }
  0x22   :  { %317 = vmatpush.bf16.msra.mxu2 %v801_v13  ;;  %v826_v60 = vld [vmem:[#allocation8 + $0x68] sm:$0xff]  ;;  %v825_v61 = vld [vmem:[#allocation8 + $0x60] sm:$0xff]  ;;  %v824_v62 = vld [vmem:[#allocation8 + $0x58] sm:$0xff] }
  0x23   :  { %395 = vmatpush.bf16.msra.mxu3 %v810_v31  ;;  %v823_v63 = vld [vmem:[#allocation8 + $0x50] sm:$0xff]  ;;  %v822_v0 = vld [vmem:[#allocation8 + $0x48] sm:$0xff]  ;;  %v821_v6 = vld [vmem:[#allocation8 + $0x40] sm:$0xff] }
  0x24   :  { %226 = vmatpush.bf16.msra.mxu0 %v784_v11 }
  0x25   :  { %239 = vmatpush.bf16.msra.mxu1 %v792_v12 }
  0x26   :  { %318 = vmatpush.bf16.msra.mxu2 %v800_v16 }
  0x27   :  { %396 = vmatpush.bf16.msra.mxu3 %v809_v32 }
  0x28   :  { %227 = vmatpush.bf16.msra.mxu0 %v783_v14 }
  0x29   :  { %240 = vmatpush.bf16.msra.mxu1 %v791_v15 }
  0x2a   :  { %319 = vmatpush.bf16.msra.mxu2 %v799_v20 }
  0x2b   :  { %397 = vmatpush.bf16.msra.mxu3 %v808_v33 }
  0x2c   :  { %228 = vmatpush.bf16.msra.mxu0 %v782_v17 }
  0x2d   :  { %241 = vmatpush.bf16.msra.mxu1 %v790_v18 }
  0x2e   :  { %320 = vmatpush.bf16.msra.mxu2 %v798_v27 }
  0x2f   :  { %398 = vmatpush.bf16.msra.mxu3 %v807_v34 }
  0x30   :  { %229 = vmatpush.bf16.msra.mxu0 %v781_v23 }
  0x31   :  { %242 = vmatpush.bf16.msra.mxu1 %v789_v24 }
  0x32   :  { %321 = vmatpush.bf16.msra.mxu2 %v797_v28 }
  0x33   :  { %230 = vmatmul.bf16.vlgmr.msra.gmra.mxu0 %v122_v25  ;;  %399 = vmatpush.bf16.msra.mxu3 %v806_v36 }
  0x34   :  { %243 = vmatmul.bf16.vlgmr.msra.gmra.mxu1 %v123_v26  ;;  %474 = vmatpush.bf16.msrb.mxu0 %v820_v46 }
  0x35   :  { %554 = vmatpush.bf16.msrb.mxu1 %v828_v58 }
  0x37   :  { %400 = vmatpush.bf16.msra.mxu3 %v805_v45 }
  0x38   :  { %475 = vmatpush.bf16.msrb.mxu0 %v819_v47 }
  0x39   :  { %555 = vmatpush.bf16.msrb.mxu1 %v827_v59 }
  0x3c   :  { %476 = vmatpush.bf16.msrb.mxu0 %v818_v48 }
  0x3d   :  { %556 = vmatpush.bf16.msrb.mxu1 %v826_v60 }
  0x40   :  { %477 = vmatpush.bf16.msrb.mxu0 %v817_v49 }
  0x41   :  { %557 = vmatpush.bf16.msrb.mxu1 %v825_v61 }
  0x44   :  { %478 = vmatpush.bf16.msrb.mxu0 %v816_v50 }
  0x45   :  { %558 = vmatpush.bf16.msrb.mxu1 %v824_v62 }
  0x48   :  { %479 = vmatpush.bf16.msrb.mxu0 %v815_v51 }
  0x49   :  { %559 = vmatpush.bf16.msrb.mxu1 %v823_v63 }
  0x4c   :  { %480 = vmatpush.bf16.msrb.mxu0 %v814_v56 }
  0x4d   :  { %560 = vmatpush.bf16.msrb.mxu1 %v822_v0 }
  0x50   :  { %481 = vmatpush.bf16.msrb.mxu0 %v813_v57 }
  0x51   :  { %561 = vmatpush.bf16.msrb.mxu1 %v821_v6 }
  0xb0   :  { %v231_v37 = vpop.f32.mrf.mxu0 }
  0xb1   :  { %v244_v38 = vpop.f32.mrf.mxu1  ;;  %v232_v39 = vadd.f32 %v836_v35, %v231_v37 }
  0xb3   :  { %v245_v40 = vadd.f32 %v244_v38, %v232_v39 }
  0xb5   :  { %v248_v41 = vmax.f32 %v245_v40, 0.0 }
  0xb7   :  { %v249_v42 = vpack.c.bf16 %v248_v41, %v248_v41 }
  0xb8   :  { %v233_v43 = vpop.f32.mrf.mxu0 }
  0xb9   :  { %v246_v44 = vpop.f32.mrf.mxu1  ;;  %322 = vmatmul.bf16.vlgmr.msra.gmra.mxu2 %v249_v42 }
 0x13c   :  { %v323_v52 = vpop.f32.mrf.mxu2 }
 0x13d   :  { %v327_v53 = vmax.f32 %v323_v52, 0.0 }
 0x13f   :  { %v328_v54 = vpack.c.bf16 %v327_v53, %v327_v53 }
 0x141   :  { %401 = vmatmul.bf16.vlgmr.msra.gmra.mxu3 %v328_v54 }
 0x144   :  { %v325_v55 = vpop.f32.mrf.mxu2 }
 0x1c4   :  { %v402_v1 = vpop.f32.mrf.mxu3 }
 0x1c5   :  { %v406_v2 = vmax.f32 %v402_v1, 0.0 }
 0x1c7   :  { %v407_v3 = vadd.f32 %v406_v2, %v248_v41 }
 0x1c9   :  { %v408_v4 = vpack.c.bf16 %v407_v3, %v407_v3 }
 0x1cb   :  { %482 = vmatmul.bf16.vlgmr.msrb.gmra.mxu0 %v408_v4 }
 0x1cc   :  { %v404_v5 = vpop.f32.mrf.mxu3 }
 0x248   :  { %v483_v7 = vpop.f32.mrf.mxu0 }
 0x249   :  { %v487_v8 = vmax.f32 %v483_v7, 0.0 }
 0x24b   :  { %v488_v9 = vpack.c.bf16 %v487_v8, %v487_v8 }
 0x24d   :  { %562 = vmatmul.bf16.vlgmr.msrb.gmra.mxu1 %v488_v9 }
 0x250   :  { %v485_v10 = vpop.f32.mrf.mxu0 }
 0x2ca   :  { %v563_v11 = vpop.f32.mrf.mxu1 }
 0x2cb   :  { %v567_v12 = vmax.f32 %v563_v11, 0.0 }
 0x2cd   :  { %v568_v13 = vadd.f32 %v567_v12, %v407_v3 }
 0x2cf   :  { %569 = vst [vmem:[#allocation10] sm:$0xff] %v568_v13 }
 0x2d0   :  { %580 = dma.vmem_to_hbm [thread:$0]  %s576_s13, 128, %s578_s16, [#allocation4]  }
 0x2d2   :  { %v565_v14 = vpop.f32.mrf.mxu1 }
 0x2d3   :  { %963 = dma.done.wait [#allocation4], 128  }
 0x2d4   :  { %964 = vsyncadd [#allocation4], 4294967168 }
 0x2d5   :  { %585 = vsyncpa [#allocation3], 1 }
 0x2d6   :  { %586 = vsyncpa [#allocation6], 1 }
 0x2d7   :  { %587 = vsyncpa [#allocation9], 1 }
 0x2d8   :  { %588 = vsyncpa [#allocation4], 1 }

</bundles_post_ra>
